<compile_context>
chip_gen: v5e
topology: v5e:2x2
jax: 0.10.0
libtpu: 0.0.40
codegen_flags: <defaults>
</compile_context>

<pallas_src>
import functools

import jax
import jax.numpy as jnp
from jax.experimental import pallas as pl
from jax.experimental.pallas import tpu as pltpu


def _round8(n):
    return ((n + 7) // 8) * 8


def _slab_layout(input_size, hidden_size):
    """Static row offsets inside the packed parameter slab (last dim = 8*H)."""
    o_wx = 0                                  # (I, 8H)   input-projection weights
    o_wf = _round8(input_size)                # (2H, 8H)  fused recurrent weights
    o_vec = o_wf + 2 * hidden_size            # 8 rows of (1, 8H) vectors:
    #   o_vec+0: Bx (all biases), +1: -b1 (layer-1 lanes only), +2: gate scale,
    #   +3: gate offset, +4: fc bias (cols [0:O])
    o_fcw = o_vec + 8                         # (2H, 8H)  fc weights (cols [0:O])
    n_rows = _round8(o_fcw + 2 * hidden_size)
    return o_wx, o_wf, o_vec, o_fcw, n_rows


def lstm_predictor_kernel(x2d_ref, w_ref, out_ref, xgb_ref):
    # x2d_ref: (T*Bp, I) time-major, batch-padded input
    # w_ref  : (rows, 8H) packed parameter slab (see _slab_layout / pack_params)
    # out_ref: (Bp, O)
    # xgb_ref: (T*Bp, 8H) VMEM scratch for the pre-computed input projection
    TBp, I = x2d_ref.shape
    Bp, O = out_ref.shape
    G8 = w_ref.shape[1]
    H = G8 // 8
    T = TBp // Bp
    o_wx, o_wf, o_vec, o_fcw, _ = _slab_layout(I, H)

    # Hoisted loads / broadcasts (live across the unrolled recurrence).
    wf = w_ref[o_wf:o_wf + 2 * H, :]                                    # (2H, 8H)
    gscale = jnp.broadcast_to(w_ref[o_vec + 2:o_vec + 3, :], (Bp, G8))  # (Bp, 8H)
    goff = jnp.broadcast_to(w_ref[o_vec + 3:o_vec + 4, :], (Bp, G8))    # (Bp, 8H)

    # Input projection (+ all biases) for all T steps in one MXU matmul; park it in
    # VMEM scratch so only one (Bp, 8H) slice is live per unrolled step.
    xgb_ref[...] = (
        jnp.dot(x2d_ref[...], w_ref[o_wx:o_wx + I, :],
                preferred_element_type=jnp.float32)
        + w_ref[o_vec:o_vec + 1, :]
    )

    def activate(pre):
        # Single EUP push over the whole gate tile.  i/f/o columns were pre-scaled
        # by 0.5, so sigmoid lanes become 0.5*tanh + 0.5 and g lanes stay tanh.
        y = jnp.tanh(pre)
        return y * gscale + goff

    def cell_update(act, c_pack):
        # Packed states: columns [0:H] = layer 0, [H:2H] = layer 1.
        i_p = act[:, 0:2 * H]
        f_p = act[:, 2 * H:4 * H]
        g_p = act[:, 4 * H:6 * H]
        o_p = act[:, 6 * H:8 * H]
        c_new = f_p * c_pack + i_p * g_p
        h_new = o_p * jnp.tanh(c_new)
        return h_new, c_new

    # Prologue ("phase -1"): all states are zero so the fused matmul contributes 0.
    # The -b1 row zeroes the layer-1 pre-activation lanes, which makes c2/h2 come
    # out exactly 0 (i1=f1=o1=0.5, g1=0) while layer 0 computes step 0 normally.
    pre0 = xgb_ref[0:Bp, :] + w_ref[o_vec + 1:o_vec + 2, :]
    h_pack, c_pack = cell_update(activate(pre0),
                                 jnp.zeros((Bp, 2 * H), jnp.float32))

    # Fused phases (statically unrolled, T is small and compile-time known).
    # At phase t the matmul consumes [h1_t, h2_{t-1}] (= the packed h state) and
    # produces layer-0 gates for step t+1 and layer-1 gates for step t; the layer-0
    # half of the last phase is dead.
    for t in range(T):
        nxt = min(t + 1, T - 1)
        additive = xgb_ref[nxt * Bp:(nxt + 1) * Bp, :]
        pre = jnp.dot(h_pack, wf, preferred_element_type=jnp.float32) + additive
        h_pack, c_pack = cell_update(activate(pre), c_pack)

    # fc(out[:, -1, :]) == fc(h2 at the last step).  fc weight rows [0:H] are zero,
    # so the packed state feeds the matmul directly (no lane extract of h2).
    out_ref[...] = (
        jnp.dot(h_pack, w_ref[o_fcw:o_fcw + 2 * H, 0:O],
                preferred_element_type=jnp.float32)
        + w_ref[o_vec + 4:o_vec + 5, 0:O]
    )


def pack_params(params):
    """Pack all LSTM + fc parameters into one f32 slab of shape (rows, 8*H).

    Gate columns are interleaved per gate type as [i0,i1,f0,f1,g0,g1,o0,o1]
    (0 = layer 0, 1 = layer 1); the i/f/o columns (and matching bias lanes) are
    pre-scaled by 0.5 so the kernel can use sigmoid(x) = 0.5*tanh(x/2) + 0.5 with a
    single tanh over the whole gate tile.  Do this once per parameter set.
    """
    H = params["w_hh_l0"].shape[1]
    I = params["w_ih_l0"].shape[1]
    O = params["fc_w"].shape[0]
    G4, G8 = 4 * H, 8 * H
    o_wx, o_wf, o_vec, o_fcw, n_rows = _slab_layout(I, H)

    # 0.5 pre-scale on i/f/o gate columns (PyTorch gate order: i, f, g, o).
    scale4 = jnp.concatenate([
        jnp.full((2 * H,), 0.5, jnp.float32),
        jnp.ones((H,), jnp.float32),
        jnp.full((H,), 0.5, jnp.float32),
    ])

    def interleave(l0, l1):
        # (R, 4H), (R, 4H) -> (R, 8H) laid out [i0,i1,f0,f1,g0,g1,o0,o1].
        parts = []
        for k in range(4):
            parts.append(l0[:, k * H:(k + 1) * H])
            parts.append(l1[:, k * H:(k + 1) * H])
        return jnp.concatenate(parts, axis=1)

    wih0 = params["w_ih_l0"].T.astype(jnp.float32) * scale4      # (I, 4H)
    whh0 = params["w_hh_l0"].T.astype(jnp.float32) * scale4      # (H, 4H)
    wih1 = params["w_ih_l1"].T.astype(jnp.float32) * scale4      # (H, 4H)
    whh1 = params["w_hh_l1"].T.astype(jnp.float32) * scale4      # (H, 4H)
    b0 = ((params["b_ih_l0"] + params["b_hh_l0"]) * scale4)[None, :]   # (1, 4H)
    b1 = ((params["b_ih_l1"] + params["b_hh_l1"]) * scale4)[None, :]   # (1, 4H)

    wx = interleave(wih0, jnp.zeros((I, G4), jnp.float32))              # (I, 8H)
    wf = jnp.concatenate(
        [interleave(whh0, wih1),
         interleave(jnp.zeros((H, G4), jnp.float32), whh1)], axis=0)    # (2H, 8H)
    bx = interleave(b0, b1)                                             # (1, 8H)
    negb1 = interleave(jnp.zeros((1, G4), jnp.float32), -b1)            # (1, 8H)

    # Post-tanh reconstruction vectors: sigmoid lanes y -> 0.5*y + 0.5, g lanes -> y.
    gscale = jnp.concatenate([jnp.full((1, 4 * H), 0.5, jnp.float32),
                              jnp.ones((1, 2 * H), jnp.float32),
                              jnp.full((1, 2 * H), 0.5, jnp.float32)], axis=1)
    goff = jnp.concatenate([jnp.full((1, 4 * H), 0.5, jnp.float32),
                            jnp.zeros((1, 2 * H), jnp.float32),
                            jnp.full((1, 2 * H), 0.5, jnp.float32)], axis=1)

    fcw = jnp.zeros((2 * H, G8), jnp.float32).at[H:, :O].set(
        params["fc_w"].T.astype(jnp.float32))
    fcb = jnp.zeros((1, G8), jnp.float32).at[0, :O].set(
        params["fc_b"].astype(jnp.float32))

    slab = jnp.zeros((n_rows, G8), jnp.float32)
    slab = slab.at[o_wx:o_wx + I, :].set(wx)
    slab = slab.at[o_wf:o_wf + 2 * H, :].set(wf)
    slab = slab.at[o_vec + 0, :].set(bx[0])
    slab = slab.at[o_vec + 1, :].set(negb1[0])
    slab = slab.at[o_vec + 2, :].set(gscale[0])
    slab = slab.at[o_vec + 3, :].set(goff[0])
    slab = slab.at[o_vec + 4, :].set(fcb[0])
    slab = slab.at[o_fcw:o_fcw + 2 * H, :].set(fcw)
    return slab


@functools.partial(jax.jit, static_argnames=("output_size",))
def lstm_forward(x, slab, *, output_size):
    """x: (B, T, I) float32 (batch_first, like PyTorch).  Returns (B, output_size)."""
    B, T, I = x.shape
    G8 = slab.shape[1]
    O = output_size

    # Pad batch to a full sublane group (8) so every matmul M-dim uses all sublanes;
    # time-major so each per-step (Bp, 8H) slice of the projection is a contiguous tile.
    Bp = max(8, _round8(B))
    x_tm = jnp.transpose(x, (1, 0, 2)).astype(jnp.float32)
    if Bp != B:
        x_tm = jnp.pad(x_tm, ((0, 0), (0, Bp - B), (0, 0)))
    x2d = x_tm.reshape(T * Bp, I)

    vmem = pl.BlockSpec(memory_space=pltpu.MemorySpace.VMEM)
    out = pl.pallas_call(
        lstm_predictor_kernel,
        out_shape=jax.ShapeDtypeStruct((Bp, O), jnp.float32),
        in_specs=[vmem, vmem],
        out_specs=vmem,
        scratch_shapes=[pltpu.VMEM((T * Bp, G8), jnp.float32)],
    )(x2d, slab)
    return out[:B]


def lstm_character_predictor(x, params):
    """Convenience wrapper: pack params (once) + run the fused kernel."""
    slab = pack_params(params)
    return lstm_forward(x, slab, output_size=params["fc_w"].shape[0])


def reference_forward(x, params):
    """Pure-JAX reference mirroring PyTorch nn.LSTM + nn.Linear semantics."""
    B, T, I = x.shape
    H = params["w_hh_l0"].shape[1]

    def cell(x_t, h, c, wih, whh, bih, bhh):
        gates = x_t @ wih.T + bih + h @ whh.T + bhh
        i, f, g, o = jnp.split(gates, 4, axis=-1)
        i, f, o = jax.nn.sigmoid(i), jax.nn.sigmoid(f), jax.nn.sigmoid(o)
        g = jnp.tanh(g)
        c = f * c + i * g
        h = o * jnp.tanh(c)
        return h, c

    h1 = jnp.zeros((B, H), jnp.float32)
    c1 = jnp.zeros((B, H), jnp.float32)
    h2 = jnp.zeros((B, H), jnp.float32)
    c2 = jnp.zeros((B, H), jnp.float32)
    for t in range(T):
        h1, c1 = cell(x[:, t, :], h1, c1,
                      params["w_ih_l0"], params["w_hh_l0"],
                      params["b_ih_l0"], params["b_hh_l0"])
        h2, c2 = cell(h1, h2, c2,
                      params["w_ih_l1"], params["w_hh_l1"],
                      params["b_ih_l1"], params["b_hh_l1"])
    return h2 @ params["fc_w"].T + params["fc_b"]


def init_params(key, input_size, hidden_size, output_size):
    """Deterministic init mimicking PyTorch's U(-1/sqrt(H), 1/sqrt(H))."""
    k = 1.0 / jnp.sqrt(jnp.float32(hidden_size))
    names_shapes = [
        ("w_ih_l0", (4 * hidden_size, input_size)),
        ("w_hh_l0", (4 * hidden_size, hidden_size)),
        ("b_ih_l0", (4 * hidden_size,)),
        ("b_hh_l0", (4 * hidden_size,)),
        ("w_ih_l1", (4 * hidden_size, hidden_size)),
        ("w_hh_l1", (4 * hidden_size, hidden_size)),
        ("b_ih_l1", (4 * hidden_size,)),
        ("b_hh_l1", (4 * hidden_size,)),
        ("fc_w", (output_size, hidden_size)),
        ("fc_b", (output_size,)),
    ]
    keys = jax.random.split(key, len(names_shapes))
    return {
        name: jax.random.uniform(kk, shape, jnp.float32, -k, k)
        for kk, (name, shape) in zip(keys, names_shapes)
    }


if __name__ == "__main__":
    # Small shapes consistent with the module's forward:
    # x: (batch=2, seq=8, input_size=16), hidden=32, output=16
    B, T, I, H, O = 2, 8, 16, 32, 16

    root = jax.random.PRNGKey(0)
    kx, kp = jax.random.split(root)
    x = jax.random.normal(kx, (B, T, I), jnp.float32)
    params = init_params(kp, I, H, O)

    out = lstm_character_predictor(x, params)
    out = jax.block_until_ready(out)

    ref = reference_forward(x, params)
    assert out.shape == (B, O)
    assert jnp.allclose(out, ref, atol=1e-5, rtol=1e-5), (
        f"max abs err {jnp.max(jnp.abs(out - ref))}"
    )
    print("KERNEL_OK")
</pallas_src>

<mosaic_0001>
module attributes {stable_mosaic.version = 11 : i64} {
  func.func @lstm_predictor_kernel(%arg0: memref<64x16xf32, #tpu.memory_space<vmem>>, %arg1: memref<152x256xf32, #tpu.memory_space<vmem>>, %arg2: memref<8x16xf32, #tpu.memory_space<vmem>>, %arg3: memref<64x256xf32, #tpu.memory_space<vmem>>) attributes {dimension_semantics = [], scalar_prefetch = 0 : i64, scratch_operands = 1 : i64, tpu.core_type = #tpu.core_type<tc>} {
    %c16 = arith.constant 16 : index
    %c0 = arith.constant 0 : index
    %0 = vector.load %arg1[%c16, %c0] : memref<152x256xf32, #tpu.memory_space<vmem>>, vector<64x256xf32>
    %c82 = arith.constant 82 : index
    %c0_0 = arith.constant 0 : index
    %1 = vector.load %arg1[%c82, %c0_0] : memref<152x256xf32, #tpu.memory_space<vmem>>, vector<1x256xf32>
    %2 = vector.shape_cast %1 : vector<1x256xf32> to vector<1x256xf32>
    %3 = vector.broadcast %2 : vector<1x256xf32> to vector<8x256xf32>
    %c83 = arith.constant 83 : index
    %c0_1 = arith.constant 0 : index
    %4 = vector.load %arg1[%c83, %c0_1] : memref<152x256xf32, #tpu.memory_space<vmem>>, vector<1x256xf32>
    %5 = vector.shape_cast %4 : vector<1x256xf32> to vector<1x256xf32>
    %6 = vector.broadcast %5 : vector<1x256xf32> to vector<8x256xf32>
    %c0_2 = arith.constant 0 : index
    %c0_3 = arith.constant 0 : index
    %7 = vector.load %arg0[%c0_2, %c0_3] : memref<64x16xf32, #tpu.memory_space<vmem>>, vector<64x16xf32>
    %c0_4 = arith.constant 0 : index
    %c0_5 = arith.constant 0 : index
    %8 = vector.load %arg1[%c0_4, %c0_5] : memref<152x256xf32, #tpu.memory_space<vmem>>, vector<16x256xf32>
    %cst = arith.constant dense<0.000000e+00> : vector<64x256xf32>
    %9 = tpu.matmul %7, %8, %cst {dimension_numbers = #tpu.dot_dimension_numbers<[1], [0], [0], [1], [0, 0, 1, 1], [], []>} : vector<64x16xf32>, vector<16x256xf32>, vector<64x256xf32> -> vector<64x256xf32>
    %c80 = arith.constant 80 : index
    %c0_6 = arith.constant 0 : index
    %10 = vector.load %arg1[%c80, %c0_6] : memref<152x256xf32, #tpu.memory_space<vmem>>, vector<1x256xf32>
    %11 = vector.broadcast %10 : vector<1x256xf32> to vector<64x256xf32>
    %12 = arith.addf %9, %11 : vector<64x256xf32>
    %c0_7 = arith.constant 0 : index
    %c0_8 = arith.constant 0 : index
    %13 = vector.load %arg3[%c0_7, %c0_8] : memref<64x256xf32, #tpu.memory_space<vmem>>, vector<64x256xf32>
    tpu.vector_store %arg3[%c0_7, %c0_8], %12 {strides = array<i32>} : memref<64x256xf32, #tpu.memory_space<vmem>>, vector<64x256xf32>,
    %c0_9 = arith.constant 0 : index
    %c0_10 = arith.constant 0 : index
    %14 = vector.load %arg3[%c0_9, %c0_10] : memref<64x256xf32, #tpu.memory_space<vmem>>, vector<8x256xf32>
    %c81 = arith.constant 81 : index
    %c0_11 = arith.constant 0 : index
    %15 = vector.load %arg1[%c81, %c0_11] : memref<152x256xf32, #tpu.memory_space<vmem>>, vector<1x256xf32>
    %16 = vector.broadcast %15 : vector<1x256xf32> to vector<8x256xf32>
    %17 = arith.addf %14, %16 : vector<8x256xf32>
    %18 = math.tanh %17 : vector<8x256xf32>
    %19 = arith.mulf %18, %3 : vector<8x256xf32>
    %20 = arith.addf %19, %6 : vector<8x256xf32>
    %cst_12 = arith.constant 0.000000e+00 : f32
    %21 = vector.broadcast %cst_12 : f32 to vector<8x64xf32>
    %22 = vector.extract_strided_slice %20 {offsets = [0, 0], sizes = [8, 64], strides = [1, 1]} : vector<8x256xf32> to vector<8x64xf32>
    %23 = vector.extract_strided_slice %20 {offsets = [0, 64], sizes = [8, 64], strides = [1, 1]} : vector<8x256xf32> to vector<8x64xf32>
    %24 = vector.extract_strided_slice %20 {offsets = [0, 128], sizes = [8, 64], strides = [1, 1]} : vector<8x256xf32> to vector<8x64xf32>
    %25 = vector.extract_strided_slice %20 {offsets = [0, 192], sizes = [8, 64], strides = [1, 1]} : vector<8x256xf32> to vector<8x64xf32>
    %26 = arith.mulf %23, %21 : vector<8x64xf32>
    %27 = arith.mulf %22, %24 : vector<8x64xf32>
    %28 = arith.addf %26, %27 : vector<8x64xf32>
    %29 = math.tanh %28 : vector<8x64xf32>
    %30 = arith.mulf %25, %29 : vector<8x64xf32>
    %c8 = arith.constant 8 : index
    %c0_13 = arith.constant 0 : index
    %31 = vector.load %arg3[%c8, %c0_13] : memref<64x256xf32, #tpu.memory_space<vmem>>, vector<8x256xf32>
    %cst_14 = arith.constant dense<0.000000e+00> : vector<8x256xf32>
    %32 = tpu.matmul %30, %0, %cst_14 {dimension_numbers = #tpu.dot_dimension_numbers<[1], [0], [0], [1], [0, 0, 1, 1], [], []>} : vector<8x64xf32>, vector<64x256xf32>, vector<8x256xf32> -> vector<8x256xf32>
    %33 = arith.addf %32, %31 : vector<8x256xf32>
    %34 = math.tanh %33 : vector<8x256xf32>
    %35 = arith.mulf %34, %3 : vector<8x256xf32>
    %36 = arith.addf %35, %6 : vector<8x256xf32>
    %37 = vector.extract_strided_slice %36 {offsets = [0, 0], sizes = [8, 64], strides = [1, 1]} : vector<8x256xf32> to vector<8x64xf32>
    %38 = vector.extract_strided_slice %36 {offsets = [0, 64], sizes = [8, 64], strides = [1, 1]} : vector<8x256xf32> to vector<8x64xf32>
    %39 = vector.extract_strided_slice %36 {offsets = [0, 128], sizes = [8, 64], strides = [1, 1]} : vector<8x256xf32> to vector<8x64xf32>
    %40 = vector.extract_strided_slice %36 {offsets = [0, 192], sizes = [8, 64], strides = [1, 1]} : vector<8x256xf32> to vector<8x64xf32>
    %41 = arith.mulf %38, %28 : vector<8x64xf32>
    %42 = arith.mulf %37, %39 : vector<8x64xf32>
    %43 = arith.addf %41, %42 : vector<8x64xf32>
    %44 = math.tanh %43 : vector<8x64xf32>
    %45 = arith.mulf %40, %44 : vector<8x64xf32>
    %c16_15 = arith.constant 16 : index
    %c0_16 = arith.constant 0 : index
    %46 = vector.load %arg3[%c16_15, %c0_16] : memref<64x256xf32, #tpu.memory_space<vmem>>, vector<8x256xf32>
    %cst_17 = arith.constant dense<0.000000e+00> : vector<8x256xf32>
    %47 = tpu.matmul %45, %0, %cst_17 {dimension_numbers = #tpu.dot_dimension_numbers<[1], [0], [0], [1], [0, 0, 1, 1], [], []>} : vector<8x64xf32>, vector<64x256xf32>, vector<8x256xf32> -> vector<8x256xf32>
    %48 = arith.addf %47, %46 : vector<8x256xf32>
    %49 = math.tanh %48 : vector<8x256xf32>
    %50 = arith.mulf %49, %3 : vector<8x256xf32>
    %51 = arith.addf %50, %6 : vector<8x256xf32>
    %52 = vector.extract_strided_slice %51 {offsets = [0, 0], sizes = [8, 64], strides = [1, 1]} : vector<8x256xf32> to vector<8x64xf32>
    %53 = vector.extract_strided_slice %51 {offsets = [0, 64], sizes = [8, 64], strides = [1, 1]} : vector<8x256xf32> to vector<8x64xf32>
    %54 = vector.extract_strided_slice %51 {offsets = [0, 128], sizes = [8, 64], strides = [1, 1]} : vector<8x256xf32> to vector<8x64xf32>
    %55 = vector.extract_strided_slice %51 {offsets = [0, 192], sizes = [8, 64], strides = [1, 1]} : vector<8x256xf32> to vector<8x64xf32>
    %56 = arith.mulf %53, %43 : vector<8x64xf32>
    %57 = arith.mulf %52, %54 : vector<8x64xf32>
    %58 = arith.addf %56, %57 : vector<8x64xf32>
    %59 = math.tanh %58 : vector<8x64xf32>
    %60 = arith.mulf %55, %59 : vector<8x64xf32>
    %c24 = arith.constant 24 : index
    %c0_18 = arith.constant 0 : index
    %61 = vector.load %arg3[%c24, %c0_18] : memref<64x256xf32, #tpu.memory_space<vmem>>, vector<8x256xf32>
    %cst_19 = arith.constant dense<0.000000e+00> : vector<8x256xf32>
    %62 = tpu.matmul %60, %0, %cst_19 {dimension_numbers = #tpu.dot_dimension_numbers<[1], [0], [0], [1], [0, 0, 1, 1], [], []>} : vector<8x64xf32>, vector<64x256xf32>, vector<8x256xf32> -> vector<8x256xf32>
    %63 = arith.addf %62, %61 : vector<8x256xf32>
    %64 = math.tanh %63 : vector<8x256xf32>
    %65 = arith.mulf %64, %3 : vector<8x256xf32>
    %66 = arith.addf %65, %6 : vector<8x256xf32>
    %67 = vector.extract_strided_slice %66 {offsets = [0, 0], sizes = [8, 64], strides = [1, 1]} : vector<8x256xf32> to vector<8x64xf32>
    %68 = vector.extract_strided_slice %66 {offsets = [0, 64], sizes = [8, 64], strides = [1, 1]} : vector<8x256xf32> to vector<8x64xf32>
    %69 = vector.extract_strided_slice %66 {offsets = [0, 128], sizes = [8, 64], strides = [1, 1]} : vector<8x256xf32> to vector<8x64xf32>
    %70 = vector.extract_strided_slice %66 {offsets = [0, 192], sizes = [8, 64], strides = [1, 1]} : vector<8x256xf32> to vector<8x64xf32>
    %71 = arith.mulf %68, %58 : vector<8x64xf32>
    %72 = arith.mulf %67, %69 : vector<8x64xf32>
    %73 = arith.addf %71, %72 : vector<8x64xf32>
    %74 = math.tanh %73 : vector<8x64xf32>
    %75 = arith.mulf %70, %74 : vector<8x64xf32>
    %c32 = arith.constant 32 : index
    %c0_20 = arith.constant 0 : index
    %76 = vector.load %arg3[%c32, %c0_20] : memref<64x256xf32, #tpu.memory_space<vmem>>, vector<8x256xf32>
    %cst_21 = arith.constant dense<0.000000e+00> : vector<8x256xf32>
    %77 = tpu.matmul %75, %0, %cst_21 {dimension_numbers = #tpu.dot_dimension_numbers<[1], [0], [0], [1], [0, 0, 1, 1], [], []>} : vector<8x64xf32>, vector<64x256xf32>, vector<8x256xf32> -> vector<8x256xf32>
    %78 = arith.addf %77, %76 : vector<8x256xf32>
    %79 = math.tanh %78 : vector<8x256xf32>
    %80 = arith.mulf %79, %3 : vector<8x256xf32>
    %81 = arith.addf %80, %6 : vector<8x256xf32>
    %82 = vector.extract_strided_slice %81 {offsets = [0, 0], sizes = [8, 64], strides = [1, 1]} : vector<8x256xf32> to vector<8x64xf32>
    %83 = vector.extract_strided_slice %81 {offsets = [0, 64], sizes = [8, 64], strides = [1, 1]} : vector<8x256xf32> to vector<8x64xf32>
    %84 = vector.extract_strided_slice %81 {offsets = [0, 128], sizes = [8, 64], strides = [1, 1]} : vector<8x256xf32> to vector<8x64xf32>
    %85 = vector.extract_strided_slice %81 {offsets = [0, 192], sizes = [8, 64], strides = [1, 1]} : vector<8x256xf32> to vector<8x64xf32>
    %86 = arith.mulf %83, %73 : vector<8x64xf32>
    %87 = arith.mulf %82, %84 : vector<8x64xf32>
    %88 = arith.addf %86, %87 : vector<8x64xf32>
    %89 = math.tanh %88 : vector<8x64xf32>
    %90 = arith.mulf %85, %89 : vector<8x64xf32>
    %c40 = arith.constant 40 : index
    %c0_22 = arith.constant 0 : index
    %91 = vector.load %arg3[%c40, %c0_22] : memref<64x256xf32, #tpu.memory_space<vmem>>, vector<8x256xf32>
    %cst_23 = arith.constant dense<0.000000e+00> : vector<8x256xf32>
    %92 = tpu.matmul %90, %0, %cst_23 {dimension_numbers = #tpu.dot_dimension_numbers<[1], [0], [0], [1], [0, 0, 1, 1], [], []>} : vector<8x64xf32>, vector<64x256xf32>, vector<8x256xf32> -> vector<8x256xf32>
    %93 = arith.addf %92, %91 : vector<8x256xf32>
    %94 = math.tanh %93 : vector<8x256xf32>
    %95 = arith.mulf %94, %3 : vector<8x256xf32>
    %96 = arith.addf %95, %6 : vector<8x256xf32>
    %97 = vector.extract_strided_slice %96 {offsets = [0, 0], sizes = [8, 64], strides = [1, 1]} : vector<8x256xf32> to vector<8x64xf32>
    %98 = vector.extract_strided_slice %96 {offsets = [0, 64], sizes = [8, 64], strides = [1, 1]} : vector<8x256xf32> to vector<8x64xf32>
    %99 = vector.extract_strided_slice %96 {offsets = [0, 128], sizes = [8, 64], strides = [1, 1]} : vector<8x256xf32> to vector<8x64xf32>
    %100 = vector.extract_strided_slice %96 {offsets = [0, 192], sizes = [8, 64], strides = [1, 1]} : vector<8x256xf32> to vector<8x64xf32>
    %101 = arith.mulf %98, %88 : vector<8x64xf32>
    %102 = arith.mulf %97, %99 : vector<8x64xf32>
    %103 = arith.addf %101, %102 : vector<8x64xf32>
    %104 = math.tanh %103 : vector<8x64xf32>
    %105 = arith.mulf %100, %104 : vector<8x64xf32>
    %c48 = arith.constant 48 : index
    %c0_24 = arith.constant 0 : index
    %106 = vector.load %arg3[%c48, %c0_24] : memref<64x256xf32, #tpu.memory_space<vmem>>, vector<8x256xf32>
    %cst_25 = arith.constant dense<0.000000e+00> : vector<8x256xf32>
    %107 = tpu.matmul %105, %0, %cst_25 {dimension_numbers = #tpu.dot_dimension_numbers<[1], [0], [0], [1], [0, 0, 1, 1], [], []>} : vector<8x64xf32>, vector<64x256xf32>, vector<8x256xf32> -> vector<8x256xf32>
    %108 = arith.addf %107, %106 : vector<8x256xf32>
    %109 = math.tanh %108 : vector<8x256xf32>
    %110 = arith.mulf %109, %3 : vector<8x256xf32>
    %111 = arith.addf %110, %6 : vector<8x256xf32>
    %112 = vector.extract_strided_slice %111 {offsets = [0, 0], sizes = [8, 64], strides = [1, 1]} : vector<8x256xf32> to vector<8x64xf32>
    %113 = vector.extract_strided_slice %111 {offsets = [0, 64], sizes = [8, 64], strides = [1, 1]} : vector<8x256xf32> to vector<8x64xf32>
    %114 = vector.extract_strided_slice %111 {offsets = [0, 128], sizes = [8, 64], strides = [1, 1]} : vector<8x256xf32> to vector<8x64xf32>
    %115 = vector.extract_strided_slice %111 {offsets = [0, 192], sizes = [8, 64], strides = [1, 1]} : vector<8x256xf32> to vector<8x64xf32>
    %116 = arith.mulf %113, %103 : vector<8x64xf32>
    %117 = arith.mulf %112, %114 : vector<8x64xf32>
    %118 = arith.addf %116, %117 : vector<8x64xf32>
    %119 = math.tanh %118 : vector<8x64xf32>
    %120 = arith.mulf %115, %119 : vector<8x64xf32>
    %c56 = arith.constant 56 : index
    %c0_26 = arith.constant 0 : index
    %121 = vector.load %arg3[%c56, %c0_26] : memref<64x256xf32, #tpu.memory_space<vmem>>, vector<8x256xf32>
    %cst_27 = arith.constant dense<0.000000e+00> : vector<8x256xf32>
    %122 = tpu.matmul %120, %0, %cst_27 {dimension_numbers = #tpu.dot_dimension_numbers<[1], [0], [0], [1], [0, 0, 1, 1], [], []>} : vector<8x64xf32>, vector<64x256xf32>, vector<8x256xf32> -> vector<8x256xf32>
    %123 = arith.addf %122, %121 : vector<8x256xf32>
    %124 = math.tanh %123 : vector<8x256xf32>
    %125 = arith.mulf %124, %3 : vector<8x256xf32>
    %126 = arith.addf %125, %6 : vector<8x256xf32>
    %127 = vector.extract_strided_slice %126 {offsets = [0, 0], sizes = [8, 64], strides = [1, 1]} : vector<8x256xf32> to vector<8x64xf32>
    %128 = vector.extract_strided_slice %126 {offsets = [0, 64], sizes = [8, 64], strides = [1, 1]} : vector<8x256xf32> to vector<8x64xf32>
    %129 = vector.extract_strided_slice %126 {offsets = [0, 128], sizes = [8, 64], strides = [1, 1]} : vector<8x256xf32> to vector<8x64xf32>
    %130 = vector.extract_strided_slice %126 {offsets = [0, 192], sizes = [8, 64], strides = [1, 1]} : vector<8x256xf32> to vector<8x64xf32>
    %131 = arith.mulf %128, %118 : vector<8x64xf32>
    %132 = arith.mulf %127, %129 : vector<8x64xf32>
    %133 = arith.addf %131, %132 : vector<8x64xf32>
    %134 = math.tanh %133 : vector<8x64xf32>
    %135 = arith.mulf %130, %134 : vector<8x64xf32>
    %c56_28 = arith.constant 56 : index
    %c0_29 = arith.constant 0 : index
    %136 = vector.load %arg3[%c56_28, %c0_29] : memref<64x256xf32, #tpu.memory_space<vmem>>, vector<8x256xf32>
    %cst_30 = arith.constant dense<0.000000e+00> : vector<8x256xf32>
    %137 = tpu.matmul %135, %0, %cst_30 {dimension_numbers = #tpu.dot_dimension_numbers<[1], [0], [0], [1], [0, 0, 1, 1], [], []>} : vector<8x64xf32>, vector<64x256xf32>, vector<8x256xf32> -> vector<8x256xf32>
    %138 = arith.addf %137, %136 : vector<8x256xf32>
    %139 = math.tanh %138 : vector<8x256xf32>
    %140 = arith.mulf %139, %3 : vector<8x256xf32>
    %141 = arith.addf %140, %6 : vector<8x256xf32>
    %142 = vector.extract_strided_slice %141 {offsets = [0, 0], sizes = [8, 64], strides = [1, 1]} : vector<8x256xf32> to vector<8x64xf32>
    %143 = vector.extract_strided_slice %141 {offsets = [0, 64], sizes = [8, 64], strides = [1, 1]} : vector<8x256xf32> to vector<8x64xf32>
    %144 = vector.extract_strided_slice %141 {offsets = [0, 128], sizes = [8, 64], strides = [1, 1]} : vector<8x256xf32> to vector<8x64xf32>
    %145 = vector.extract_strided_slice %141 {offsets = [0, 192], sizes = [8, 64], strides = [1, 1]} : vector<8x256xf32> to vector<8x64xf32>
    %146 = arith.mulf %143, %133 : vector<8x64xf32>
    %147 = arith.mulf %142, %144 : vector<8x64xf32>
    %148 = arith.addf %146, %147 : vector<8x64xf32>
    %149 = math.tanh %148 : vector<8x64xf32>
    %150 = arith.mulf %145, %149 : vector<8x64xf32>
    %c88 = arith.constant 88 : index
    %c0_31 = arith.constant 0 : index
    %151 = vector.load %arg1[%c88, %c0_31] : memref<152x256xf32, #tpu.memory_space<vmem>>, vector<64x16xf32>
    %cst_32 = arith.constant dense<0.000000e+00> : vector<8x16xf32>
    %152 = tpu.matmul %150, %151, %cst_32 {dimension_numbers = #tpu.dot_dimension_numbers<[1], [0], [0], [1], [0, 0, 1, 1], [], []>} : vector<8x64xf32>, vector<64x16xf32>, vector<8x16xf32> -> vector<8x16xf32>
    %c84 = arith.constant 84 : index
    %c0_33 = arith.constant 0 : index
    %153 = vector.load %arg1[%c84, %c0_33] : memref<152x256xf32, #tpu.memory_space<vmem>>, vector<1x16xf32>
    %154 = vector.broadcast %153 : vector<1x16xf32> to vector<8x16xf32>
    %155 = arith.addf %152, %154 : vector<8x16xf32>
    %c0_34 = arith.constant 0 : index
    %c0_35 = arith.constant 0 : index
    %156 = vector.load %arg2[%c0_34, %c0_35] : memref<8x16xf32, #tpu.memory_space<vmem>>, vector<8x16xf32>
    tpu.vector_store %arg2[%c0_34, %c0_35], %155 {strides = array<i32>} : memref<8x16xf32, #tpu.memory_space<vmem>>, vector<8x16xf32>,
    return
  }
}

</mosaic_0001>

<bundles_post_ra>
// kernel: lstm_forward.1
= control target key start
LH: loop header
LB: loop body
LE: loop exit
PB: predicated region body
PF: predicated region fallthrough
CT: control target
= control target key end

     0   :  { %7 = vsyncpa [#allocation4], 0  ;;  %s877_s12 = smov [#allocation3]   ;;  %s878_s14 = smov 256   ;;  %s1206_s0 = inlined_call_operand.vmem [shape: f32[64,16], index: 0, kind: input, shape index: {}]   ;;  %s1207_s1 = inlined_call_operand.hbm [shape: f32[152,256], index: 1, kind: input, shape index: {}]   ;;  %s1208_s2 = inlined_call_operand.vmem [shape: f32[8,16], index: 2, kind: output, shape index: {}]  }
   0x1   :  { %s14_s11 = sshll.u32 %s1207_s1, 4  ;;  %s16_s13 = sshll.u32 %s877_s12, 4  ;;  %s15_s11 = int_to_ptr.hbm [resolvable:$true] %s14_s11  ;;  %s17_s13 = int_to_ptr.vmem [resolvable:$true] %s16_s13 }
   0x2   :  { %s879_s15 = smov 16  }
   0x3   :  { %22 = dma.hbm_to_vmem [thread:$0]  %s15_s11, 4864, %s17_s13, [#allocation4], %s878_s14, %s878_s14, %s879_s15  }
   0x4   :  { %875 = dma.done.wait [#allocation4], 4864  }
   0x5   :  { %876 = vsyncadd [#allocation4], 4294962432  ;;  %v67_v0 = vld [vmem:[#allocation3 + $0x10] sm:$0xff]  ;;  %v68_v1 = vld [vmem:[#allocation3 + $0x18] sm:$0xff]  ;;  %vm76_vm0 = vcmask 130048   ;;  %s880_s1 = smov 64  }
   0x6   :  { %v65_v2 = vld [vmem:[#allocation3] sm:$0xff]  ;;  %115 = vmatpush.msra.mxu0 %v67_v0  ;;  %156 = vmatpush.msra.mxu1 %v68_v1  ;;  %v66_v3 = vld [vmem:[#allocation3 + $0x8] sm:$0xff]  ;;  %v923_v30 = vld [vmem:[#allocation3 + $0x90] sm:$0xff]  ;;  %vm230_vm1 = vcmask 523264  }
   0x7   :  { %v57_v4 = vld [vmem:[%s1206_s0] sm:$0xff]  ;;  %v925_v31 = vld [vmem:[#allocation3 + $0x98] sm:$0xff]  ;;  %241 = vmatpush.msra.mxu2 %v923_v30  ;;  %v931_v33 = vld [vmem:[#allocation3 + $0x88] sm:$0xff] }
   0x8   :  { %116 = vmatpush.msra.mxu0 %v65_v2  ;;  %157 = vmatpush.msra.mxu1 %v66_v3  ;;  %v70_v5 = vld [vmem:[#allocation3 + $0xa0] ss:$8 sm:$0x3]  ;;  %v202_v6 = vld [vmem:[#allocation3 + $0xa1] ss:$8 sm:$0x3] }
   0x9   :  { %760 = vmatmul.msk.f32.vlgmr.msra.gmra.mxu0 %vm76_vm0, %v57_v4  ;;  %768 = vmatmul.msk.f32.vlgmr.msra.gmra.mxu1 %vm76_vm0, %v57_v4  ;;  %v904_v7 = vperm.slane %v70_v5, 0  ;;  %v906_v8 = vperm.slane %v70_v5, 1  ;;  %v204_v9 = vperm.slane %v202_v6, 0  ;;  %v205_v10 = vperm.slane %v202_v6, 1  ;;  %v927_v32 = vld [vmem:[#allocation3 + $0x80] sm:$0xff]  ;;  %v933_v34 = vld [vmem:[#allocation3 + $0x70] sm:$0xff] }
   0xa   :  { %v44_v17 = vld [vmem:[#allocation3 + $0xa2] ss:$8 sm:$0x3]  ;;  %v51_v18 = vld [vmem:[#allocation3 + $0xa3] ss:$8 sm:$0x3]  ;;  %261 = vmatpush.msra.mxu3 %v925_v31  ;;  %489 = vmatpush.msrb.mxu0 %v923_v30 }
   0xb   :  { %v910_v19 = vperm.slane %v44_v17, 0  ;;  %v912_v20 = vperm.slane %v44_v17, 1  ;;  %v914_v21 = vperm.slane %v51_v18, 0  ;;  %v916_v23 = vperm.slane %v51_v18, 1  ;;  %v935_v35 = vld [vmem:[#allocation3 + $0x78] sm:$0xff]  ;;  %509 = vmatpush.msrb.mxu1 %v925_v31  ;;  %242 = vmatpush.msra.mxu2 %v927_v32  ;;  %v941_v36 = vld [vmem:[#allocation3 + $0x60] sm:$0xff] }
   0xc   :  { %262 = vmatpush.msra.mxu3 %v931_v33  ;;  %v943_v37 = vld [vmem:[#allocation3 + $0x68] sm:$0xff]  ;;  %490 = vmatpush.msrb.mxu0 %v927_v32  ;;  %v949_v38 = vld [vmem:[#allocation3 + $0x50] sm:$0xff]  ;;  %v951_v39 = vld [vmem:[#allocation3 + $0x58] sm:$0xff] }
   0xd   :  { %510 = vmatpush.msrb.mxu1 %v931_v33  ;;  %243 = vmatpush.msra.mxu2 %v933_v34  ;;  %v957_v40 = vld [vmem:[#allocation3 + $0x40] sm:$0xff]  ;;  %v959_v41 = vld [vmem:[#allocation3 + $0x48] sm:$0xff]  ;;  %v965_v42 = vld [vmem:[#allocation3 + $0x30] sm:$0xff] }
   0xe   :  { %263 = vmatpush.msra.mxu3 %v935_v35  ;;  %491 = vmatpush.msrb.mxu0 %v933_v34  ;;  %v967_v43 = vld [vmem:[#allocation3 + $0x38] sm:$0xff]  ;;  %v983_v49 = vld [vmem:[#allocation3 + $0x20] sm:$0xff]  ;;  %v985_v50 = vld [vmem:[#allocation3 + $0x28] sm:$0xff] }
   0xf   :  { %511 = vmatpush.msrb.mxu1 %v935_v35  ;;  %244 = vmatpush.msra.mxu2 %v941_v36  ;;  %v58_v51 = vld [vmem:[%s1206_s0 + $0x8] sm:$0xff] }
  0x10   :  { %264 = vmatpush.msra.mxu3 %v943_v37  ;;  %492 = vmatpush.msrb.mxu0 %v941_v36 }
  0x11   :  { %512 = vmatpush.msrb.mxu1 %v943_v37  ;;  %245 = vmatpush.msra.mxu2 %v949_v38 }
  0x12   :  { %265 = vmatpush.msra.mxu3 %v951_v39  ;;  %493 = vmatpush.msrb.mxu0 %v949_v38 }
  0x13   :  { %513 = vmatpush.msrb.mxu1 %v951_v39  ;;  %246 = vmatpush.msra.mxu2 %v957_v40 }
  0x14   :  { %266 = vmatpush.msra.mxu3 %v959_v41  ;;  %494 = vmatpush.msrb.mxu0 %v957_v40 }
  0x15   :  { %514 = vmatpush.msrb.mxu1 %v959_v41  ;;  %247 = vmatpush.msra.mxu2 %v965_v42 }
  0x16   :  { %267 = vmatpush.msra.mxu3 %v967_v43  ;;  %495 = vmatpush.msrb.mxu0 %v965_v42 }
  0x17   :  { %515 = vmatpush.msrb.mxu1 %v967_v43  ;;  %248 = vmatpush.msra.mxu2 %v983_v49 }
  0x18   :  { %268 = vmatpush.msra.mxu3 %v985_v50  ;;  %761 = vmatmul.msk.f32.gmra.mxu0 %vm76_vm0, %v58_v51 }
  0x19   :  { %303 = vmatpush.msrb.mxu2 %v923_v30  ;;  %769 = vmatmul.msk.f32.gmra.mxu1 %vm76_vm0, %v58_v51 }
  0x1a   :  { %323 = vmatpush.msrb.mxu3 %v925_v31  ;;  %496 = vmatpush.msrb.mxu0 %v983_v49 }
  0x1b   :  { %304 = vmatpush.msrb.mxu2 %v927_v32  ;;  %516 = vmatpush.msrb.mxu1 %v985_v50 }
  0x1c   :  { %324 = vmatpush.msrb.mxu3 %v931_v33  ;;  %613 = vmatpush.msra.mxu0 %v923_v30 }
  0x1d   :  { %305 = vmatpush.msrb.mxu2 %v933_v34  ;;  %633 = vmatpush.msra.mxu1 %v925_v31 }
  0x1e   :  { %325 = vmatpush.msrb.mxu3 %v935_v35  ;;  %614 = vmatpush.msra.mxu0 %v927_v32 }
  0x1f   :  { %306 = vmatpush.msrb.mxu2 %v941_v36  ;;  %634 = vmatpush.msra.mxu1 %v931_v33 }
  0x20   :  { %326 = vmatpush.msrb.mxu3 %v943_v37  ;;  %615 = vmatpush.msra.mxu0 %v933_v34 }
  0x21   :  { %307 = vmatpush.msrb.mxu2 %v949_v38  ;;  %635 = vmatpush.msra.mxu1 %v935_v35 }
  0x22   :  { %327 = vmatpush.msrb.mxu3 %v951_v39  ;;  %616 = vmatpush.msra.mxu0 %v941_v36 }
  0x23   :  { %308 = vmatpush.msrb.mxu2 %v957_v40  ;;  %636 = vmatpush.msra.mxu1 %v943_v37 }
  0x24   :  { %328 = vmatpush.msrb.mxu3 %v959_v41  ;;  %617 = vmatpush.msra.mxu0 %v949_v38 }
  0x25   :  { %309 = vmatpush.msrb.mxu2 %v965_v42  ;;  %637 = vmatpush.msra.mxu1 %v951_v39 }
  0x26   :  { %329 = vmatpush.msrb.mxu3 %v967_v43  ;;  %618 = vmatpush.msra.mxu0 %v957_v40 }
  0x27   :  { %310 = vmatpush.msrb.mxu2 %v983_v49  ;;  %638 = vmatpush.msra.mxu1 %v959_v41 }
  0x28   :  { %330 = vmatpush.msrb.mxu3 %v985_v50  ;;  %619 = vmatpush.msra.mxu0 %v965_v42 }
  0x29   :  { %639 = vmatpush.msra.mxu1 %v967_v43 }
  0x2a   :  { %620 = vmatpush.msra.mxu0 %v983_v49 }
  0x2b   :  { %640 = vmatpush.msra.mxu1 %v985_v50 }
  0x86   :  { %v118_v11 = vpop.f32.mrf.mxu0  ;;  %v159_v12 = vpop.f32.mrf.mxu1 }
  0x87   :  { %v119_v13 = vadd.f32 %v118_v11, %v904_v7  ;;  %v160_v14 = vadd.f32 %v159_v12, %v906_v8  ;;  %v59_v11 = vld [vmem:[%s1206_s0 + $0x10] sm:$0xff] }
  0x88   :  { %762 = vmatmul.msk.f32.gmra.mxu0 %vm76_vm0, %v59_v11  ;;  %770 = vmatmul.msk.f32.gmra.mxu1 %vm76_vm0, %v59_v11 }
  0x89   :  { %v208_v15 = vadd.f32 %v204_v9, %v119_v13  ;;  %v209_v16 = vadd.f32 %v205_v10, %v160_v14 }
  0x8b   :  { %797 = vtanh.f32 %v208_v15 }
  0x8c   :  { %799 = vtanh.f32 %v209_v16 }
  0x91   :  { %v798_v22 = vpop.eup %797 }
  0x92   :  { %v800_v24 = vpop.eup %799  ;;  %v212_v25 = vmul.f32 %v798_v22, %v910_v19 }
  0x93   :  { %v213_v26 = vmul.f32 %v800_v24, %v912_v20 }
  0x94   :  { %v214_v27 = vadd.f32 %v212_v25, %v914_v21 }
  0x95   :  { %v215_v28 = vadd.f32 %v213_v26, %v916_v23  ;;  %v121_v53 = vpop.f32.mrf.mxu0 }
  0x96   :  { %v216_v44 = vmul.f32 0.0, %v214_v27  ;;  %v162_v54 = vpop.f32.mrf.mxu1  ;;  %v122_v55 = vadd.f32 %v121_v53, %v904_v7  ;;  %v60_v53 = vld [vmem:[%s1206_s0 + $0x18] sm:$0xff] }
  0x97   :  { %v217_v29 = vmul.f32 %v215_v28, %v214_v27  ;;  %v163_v56 = vadd.f32 %v162_v54, %v906_v8  ;;  %763 = vmatmul.msk.f32.gmra.mxu0 %vm76_vm0, %v60_v53  ;;  %771 = vmatmul.msk.f32.gmra.mxu1 %vm76_vm0, %v60_v53 }
  0x99   :  { %219 = vrot.lane.b32.xlu0 %v217_v29, %s880_s1 }
 0x105   :  { %v124_v13 = vpop.f32.mrf.mxu0  ;;  %v165_v14 = vpop.f32.mrf.mxu1 }
 0x106   :  { %v125_v15 = vadd.f32 %v124_v13, %v904_v7  ;;  %v166_v16 = vadd.f32 %v165_v14, %v906_v8  ;;  %v61_v13 = vld [vmem:[%s1206_s0 + $0x20] sm:$0xff] }
 0x107   :  { %764 = vmatmul.msk.f32.gmra.mxu0 %vm76_vm0, %v61_v13  ;;  %772 = vmatmul.msk.f32.gmra.mxu1 %vm76_vm0, %v61_v13 }
 0x10b   :  { %v220_v45 = vpop.permute.xlu0 %219 }
 0x10c   :  { %v979_v46 = vadd.f32 %v220_v45, %v216_v44 }
 0x10e   :  { %801 = vtanh.f32 %v979_v46 }
 0x114   :  { %v802_v47 = vpop.eup %801 }
 0x115   :  { %v224_v48 = vmul.f32 %v802_v47, %v215_v28 }
 0x117   :  { %228 = vrot.lane.b32.xlu0 %v224_v48, %s880_s1 }
 0x189   :  { %v229_v52 = vpop.permute.xlu0 %228 }
 0x18a   :  { %776 = vmatmul.msk.f32.vlgmr.msra.gmra.mxu2 %vm230_vm1, %v229_v52  ;;  %777 = vmatmul.msk.f32.vlgmr.msra.gmra.mxu3 %vm230_vm1, %v229_v52 }
 0x18b   :  { %365 = vmatpush.msra.mxu2 %v923_v30  ;;  %385 = vmatpush.msra.mxu3 %v925_v31 }
 0x18d   :  { %366 = vmatpush.msra.mxu2 %v927_v32  ;;  %386 = vmatpush.msra.mxu3 %v931_v33 }
 0x18f   :  { %367 = vmatpush.msra.mxu2 %v933_v34  ;;  %387 = vmatpush.msra.mxu3 %v935_v35 }
 0x191   :  { %368 = vmatpush.msra.mxu2 %v941_v36  ;;  %388 = vmatpush.msra.mxu3 %v943_v37 }
 0x193   :  { %369 = vmatpush.msra.mxu2 %v949_v38  ;;  %389 = vmatpush.msra.mxu3 %v951_v39 }
 0x195   :  { %370 = vmatpush.msra.mxu2 %v957_v40  ;;  %390 = vmatpush.msra.mxu3 %v959_v41 }
 0x197   :  { %371 = vmatpush.msra.mxu2 %v965_v42  ;;  %391 = vmatpush.msra.mxu3 %v967_v43 }
 0x199   :  { %372 = vmatpush.msra.mxu2 %v983_v49  ;;  %392 = vmatpush.msra.mxu3 %v985_v50 }
 0x20d   :  { %v250_v57 = vpop.f32.mrf.mxu2  ;;  %v270_v58 = vpop.f32.mrf.mxu3 }
 0x20e   :  { %v251_v59 = vadd.f32 %v250_v57, %v122_v55  ;;  %v271_v60 = vadd.f32 %v270_v58, %v163_v56  ;;  %v127_v55 = vpop.f32.mrf.mxu0  ;;  %v168_v56 = vpop.f32.mrf.mxu1 }
 0x20f   :  { %v128_v57 = vadd.f32 %v127_v55, %v904_v7  ;;  %v169_v58 = vadd.f32 %v168_v56, %v906_v8 }
 0x210   :  { %803 = vtanh.f32 %v251_v59 }
 0x211   :  { %805 = vtanh.f32 %v271_v60 }
 0x216   :  { %v804_v61 = vpop.eup %803 }
 0x217   :  { %v806_v62 = vpop.eup %805  ;;  %v275_v63 = vmul.f32 %v804_v61, %v910_v19 }
 0x218   :  { %v276_v0 = vmul.f32 %v806_v62, %v912_v20 }
 0x219   :  { %v277_v1 = vadd.f32 %v275_v63, %v914_v21 }
 0x21a   :  { %v278_v2 = vadd.f32 %v276_v0, %v916_v23 }
 0x21b   :  { %v279_v4 = vmul.f32 %v277_v1, %v979_v46 }
 0x21c   :  { %v280_v3 = vmul.f32 %v278_v2, %v277_v1 }
 0x21e   :  { %282 = vrot.lane.b32.xlu1 %v280_v3, %s880_s1 }
 0x290   :  { %v283_v5 = vpop.permute.xlu1 %282 }
 0x291   :  { %v285_v6 = vadd.f32 %v283_v5, %v279_v4 }
 0x293   :  { %807 = vtanh.f32 %v285_v6 }
 0x299   :  { %v808_v9 = vpop.eup %807 }
 0x29a   :  { %v287_v10 = vmul.f32 %v808_v9, %v278_v2 }
 0x29c   :  { %291 = vrot.lane.b32.xlu1 %v287_v10, %s880_s1 }
 0x30e   :  { %v292_v12 = vpop.permute.xlu1 %291 }
 0x30f   :  { %778 = vmatmul.msk.f32.vlgmr.msrb.gmra.mxu2 %vm230_vm1, %v292_v12  ;;  %779 = vmatmul.msk.f32.vlgmr.msrb.gmra.mxu3 %vm230_vm1, %v292_v12 }
 0x310   :  { %427 = vmatpush.msrb.mxu2 %v923_v30  ;;  %447 = vmatpush.msrb.mxu3 %v925_v31 }
 0x312   :  { %428 = vmatpush.msrb.mxu2 %v927_v32  ;;  %448 = vmatpush.msrb.mxu3 %v931_v33 }
 0x314   :  { %429 = vmatpush.msrb.mxu2 %v933_v34  ;;  %449 = vmatpush.msrb.mxu3 %v935_v35 }
 0x316   :  { %430 = vmatpush.msrb.mxu2 %v941_v36  ;;  %450 = vmatpush.msrb.mxu3 %v943_v37 }
 0x318   :  { %431 = vmatpush.msrb.mxu2 %v949_v38  ;;  %451 = vmatpush.msrb.mxu3 %v951_v39 }
 0x31a   :  { %432 = vmatpush.msrb.mxu2 %v957_v40  ;;  %452 = vmatpush.msrb.mxu3 %v959_v41 }
 0x31c   :  { %433 = vmatpush.msrb.mxu2 %v965_v42  ;;  %453 = vmatpush.msrb.mxu3 %v967_v43 }
 0x31e   :  { %434 = vmatpush.msrb.mxu2 %v983_v49  ;;  %454 = vmatpush.msrb.mxu3 %v985_v50 }
 0x392   :  { %v312_v17 = vpop.f32.mrf.mxu2  ;;  %v332_v18 = vpop.f32.mrf.mxu3 }
 0x393   :  { %v313_v22 = vadd.f32 %v312_v17, %v125_v15  ;;  %v333_v24 = vadd.f32 %v332_v18, %v166_v16  ;;  %v63_v15 = vld [vmem:[%s1206_s0 + $0x30] sm:$0xff]  ;;  %v64_v16 = vld [vmem:[%s1206_s0 + $0x38] sm:$0xff] }
 0x395   :  { %809 = vtanh.f32 %v313_v22 }
 0x396   :  { %811 = vtanh.f32 %v333_v24 }
 0x39b   :  { %v810_v25 = vpop.eup %809 }
 0x39c   :  { %v812_v26 = vpop.eup %811  ;;  %v337_v27 = vmul.f32 %v810_v25, %v910_v19 }
 0x39d   :  { %v338_v28 = vmul.f32 %v812_v26, %v912_v20 }
 0x39e   :  { %v339_v29 = vadd.f32 %v337_v27, %v914_v21 }
 0x39f   :  { %v340_v44 = vadd.f32 %v338_v28, %v916_v23 }
 0x3a0   :  { %v341_v46 = vmul.f32 %v339_v29, %v285_v6 }
 0x3a1   :  { %v342_v45 = vmul.f32 %v340_v44, %v339_v29 }
 0x3a3   :  { %344 = vrot.lane.b32.xlu2 %v342_v45, %s880_s1 }
 0x3fd   :  { %v345_v47 = vpop.permute.xlu2 %344 }
 0x3fe   :  { %v347_v48 = vadd.f32 %v345_v47, %v341_v46 }
 0x400   :  { %813 = vtanh.f32 %v347_v48 }
 0x406   :  { %v814_v51 = vpop.eup %813 }
 0x407   :  { %v349_v52 = vmul.f32 %v814_v51, %v340_v44 }
 0x409   :  { %353 = vrot.lane.b32.xlu2 %v349_v52, %s880_s1 }
 0x463   :  { %v354_v54 = vpop.permute.xlu2 %353 }
 0x464   :  { %780 = vmatmul.msk.f32.vlgmr.msra.gmra.mxu2 %vm230_vm1, %v354_v54  ;;  %781 = vmatmul.msk.f32.vlgmr.msra.gmra.mxu3 %vm230_vm1, %v354_v54 }
 0x465   :  { %551 = vmatpush.msra.mxu2 %v923_v30  ;;  %571 = vmatpush.msra.mxu3 %v925_v31 }
 0x467   :  { %552 = vmatpush.msra.mxu2 %v927_v32  ;;  %572 = vmatpush.msra.mxu3 %v931_v33 }
 0x469   :  { %553 = vmatpush.msra.mxu2 %v933_v34  ;;  %573 = vmatpush.msra.mxu3 %v935_v35 }
 0x46b   :  { %554 = vmatpush.msra.mxu2 %v941_v36  ;;  %574 = vmatpush.msra.mxu3 %v943_v37 }
 0x46d   :  { %555 = vmatpush.msra.mxu2 %v949_v38  ;;  %575 = vmatpush.msra.mxu3 %v951_v39 }
 0x46f   :  { %556 = vmatpush.msra.mxu2 %v957_v40  ;;  %576 = vmatpush.msra.mxu3 %v959_v41 }
 0x471   :  { %557 = vmatpush.msra.mxu2 %v965_v42  ;;  %577 = vmatpush.msra.mxu3 %v967_v43 }
 0x473   :  { %558 = vmatpush.msra.mxu2 %v983_v49  ;;  %578 = vmatpush.msra.mxu3 %v985_v50 }
 0x4e7   :  { %v374_v59 = vpop.f32.mrf.mxu2  ;;  %v394_v60 = vpop.f32.mrf.mxu3 }
 0x4e8   :  { %v375_v61 = vadd.f32 %v374_v59, %v128_v57  ;;  %v395_v62 = vadd.f32 %v394_v60, %v169_v58 }
 0x4ea   :  { %815 = vtanh.f32 %v375_v61 }
 0x4eb   :  { %817 = vtanh.f32 %v395_v62 }
 0x4f0   :  { %v816_v63 = vpop.eup %815 }
 0x4f1   :  { %v818_v0 = vpop.eup %817  ;;  %v399_v1 = vmul.f32 %v816_v63, %v910_v19 }
 0x4f2   :  { %v400_v2 = vmul.f32 %v818_v0, %v912_v20 }
 0x4f3   :  { %v401_v3 = vadd.f32 %v399_v1, %v914_v21 }
 0x4f4   :  { %v402_v4 = vadd.f32 %v400_v2, %v916_v23 }
 0x4f5   :  { %v403_v6 = vmul.f32 %v401_v3, %v347_v48 }
 0x4f6   :  { %v404_v5 = vmul.f32 %v402_v4, %v401_v3 }
 0x4f8   :  { %406 = vrot.lane.b32.xlu0 %v404_v5, %s880_s1 }
 0x56a   :  { %v407_v9 = vpop.permute.xlu0 %406 }
 0x56b   :  { %v409_v10 = vadd.f32 %v407_v9, %v403_v6 }
 0x56d   :  { %819 = vtanh.f32 %v409_v10 }
 0x573   :  { %v820_v11 = vpop.eup %819 }
 0x574   :  { %v411_v12 = vmul.f32 %v820_v11, %v402_v4 }
 0x576   :  { %415 = vrot.lane.b32.xlu1 %v411_v12, %s880_s1 }
 0x5e8   :  { %v416_v14 = vpop.permute.xlu1 %415 }
 0x5e9   :  { %782 = vmatmul.msk.f32.vlgmr.msrb.gmra.mxu2 %vm230_vm1, %v416_v14  ;;  %783 = vmatmul.msk.f32.vlgmr.msrb.gmra.mxu3 %vm230_vm1, %v416_v14 }
 0x5ea   :  { %673 = vmatpush.msrb.mxu2 %v923_v30  ;;  %693 = vmatpush.msrb.mxu3 %v925_v31  ;;  %v130_v30 = vpop.f32.mrf.mxu0  ;;  %v171_v31 = vpop.f32.mrf.mxu1 }
 0x5ec   :  { %674 = vmatpush.msrb.mxu2 %v927_v32  ;;  %694 = vmatpush.msrb.mxu3 %v931_v33  ;;  %v131_v32 = vadd.f32 %v130_v30, %v904_v7  ;;  %v172_v33 = vadd.f32 %v171_v31, %v906_v8 }
 0x5ee   :  { %675 = vmatpush.msrb.mxu2 %v933_v34  ;;  %695 = vmatpush.msrb.mxu3 %v935_v35 }
 0x5f0   :  { %676 = vmatpush.msrb.mxu2 %v941_v36  ;;  %696 = vmatpush.msrb.mxu3 %v943_v37 }
 0x5f2   :  { %677 = vmatpush.msrb.mxu2 %v949_v38  ;;  %697 = vmatpush.msrb.mxu3 %v951_v39 }
 0x5f4   :  { %678 = vmatpush.msrb.mxu2 %v957_v40  ;;  %698 = vmatpush.msrb.mxu3 %v959_v41 }
 0x5f6   :  { %679 = vmatpush.msrb.mxu2 %v965_v42  ;;  %699 = vmatpush.msrb.mxu3 %v967_v43 }
 0x5f8   :  { %680 = vmatpush.msrb.mxu2 %v983_v49  ;;  %700 = vmatpush.msrb.mxu3 %v985_v50  ;;  %v62_v50 = vld [vmem:[%s1206_s0 + $0x28] sm:$0xff] }
 0x5f9   :  { %765 = vmatmul.msk.f32.gmra.mxu0 %vm76_vm0, %v62_v50  ;;  %773 = vmatmul.msk.f32.gmra.mxu1 %vm76_vm0, %v62_v50 }
 0x601   :  { %766 = vmatmul.msk.f32.gmra.mxu0 %vm76_vm0, %v63_v15  ;;  %774 = vmatmul.msk.f32.gmra.mxu1 %vm76_vm0, %v63_v15 }
 0x609   :  { %767 = vmatmul.msk.f32.gmra.mxu0 %vm76_vm0, %v64_v16  ;;  %775 = vmatmul.msk.f32.gmra.mxu1 %vm76_vm0, %v64_v16 }
 0x66c   :  { %v436_v34 = vpop.f32.mrf.mxu2  ;;  %v456_v35 = vpop.f32.mrf.mxu3 }
 0x66d   :  { %v437_v36 = vadd.f32 %v436_v34, %v131_v32  ;;  %v457_v37 = vadd.f32 %v456_v35, %v172_v33 }
 0x66f   :  { %821 = vtanh.f32 %v437_v36 }
 0x670   :  { %823 = vtanh.f32 %v457_v37 }
 0x675   :  { %v822_v38 = vpop.eup %821 }
 0x676   :  { %v824_v39 = vpop.eup %823  ;;  %v461_v40 = vmul.f32 %v822_v38, %v910_v19  ;;  %v133_v27 = vpop.f32.mrf.mxu0 }
 0x677   :  { %v462_v41 = vmul.f32 %v824_v39, %v912_v20  ;;  %v174_v28 = vpop.f32.mrf.mxu1  ;;  %v134_v47 = vadd.f32 %v133_v27, %v904_v7 }
 0x678   :  { %v463_v42 = vadd.f32 %v461_v40, %v914_v21  ;;  %v175_v48 = vadd.f32 %v174_v28, %v906_v8 }
 0x679   :  { %v464_v43 = vadd.f32 %v462_v41, %v916_v23 }
 0x67a   :  { %v465_v17 = vmul.f32 %v463_v42, %v409_v10 }
 0x67b   :  { %v466_v49 = vmul.f32 %v464_v43, %v463_v42 }
 0x67d   :  { %468 = vrot.lane.b32.xlu2 %v466_v49, %s880_s1 }
 0x67e   :  { %v136_v29 = vpop.f32.mrf.mxu0 }
 0x67f   :  { %v177_v44 = vpop.f32.mrf.mxu1  ;;  %v137_v4 = vadd.f32 %v136_v29, %v904_v7 }
 0x680   :  { %v178_v5 = vadd.f32 %v177_v44, %v906_v8 }
 0x686   :  { %v139_v45 = vpop.f32.mrf.mxu0 }
 0x687   :  { %v180_v46 = vpop.f32.mrf.mxu1  ;;  %v140_v40 = vadd.f32 %v139_v45, %v904_v7 }
 0x688   :  { %v181_v41 = vadd.f32 %v180_v46, %v906_v8 }
 0x6d7   :  { %v469_v18 = vpop.permute.xlu2 %468 }
 0x6d8   :  { %v471_v22 = vadd.f32 %v469_v18, %v465_v17 }
 0x6da   :  { %825 = vtanh.f32 %v471_v22 }
 0x6e0   :  { %v826_v24 = vpop.eup %825 }
 0x6e1   :  { %v473_v25 = vmul.f32 %v826_v24, %v464_v43 }
 0x6e3   :  { %477 = vrot.lane.b32.xlu0 %v473_v25, %s880_s1 }
 0x755   :  { %v478_v26 = vpop.permute.xlu0 %477 }
 0x756   :  { %784 = vmatmul.msk.f32.vlgmr.msrb.gmra.mxu0 %vm230_vm1, %v478_v26  ;;  %785 = vmatmul.msk.f32.vlgmr.msrb.gmra.mxu1 %vm230_vm1, %v478_v26 }
 0x7d3   :  { %v498_v51 = vpop.f32.mrf.mxu0  ;;  %v518_v52 = vpop.f32.mrf.mxu1 }
 0x7d4   :  { %v499_v53 = vadd.f32 %v498_v51, %v134_v47  ;;  %v519_v54 = vadd.f32 %v518_v52, %v175_v48 }
 0x7d6   :  { %827 = vtanh.f32 %v499_v53 }
 0x7d7   :  { %829 = vtanh.f32 %v519_v54 }
 0x7dc   :  { %v828_v55 = vpop.eup %827 }
 0x7dd   :  { %v830_v56 = vpop.eup %829  ;;  %v523_v57 = vmul.f32 %v828_v55, %v910_v19 }
 0x7de   :  { %v524_v58 = vmul.f32 %v830_v56, %v912_v20 }
 0x7df   :  { %v525_v59 = vadd.f32 %v523_v57, %v914_v21  ;;  %v727_v57 = vld [vmem:[#allocation3 + $0x120] sm:$0xff] }
 0x7e0   :  { %v526_v60 = vadd.f32 %v524_v58, %v916_v23  ;;  %v726_v58 = vld [vmem:[#allocation3 + $0x110] sm:$0xff]  ;;  %742 = vmatpush.msrb.mxu0 %v727_v57 }
 0x7e1   :  { %v527_v62 = vmul.f32 %v525_v59, %v471_v22 }
 0x7e2   :  { %v528_v61 = vmul.f32 %v526_v60, %v525_v59  ;;  %v725_v59 = vld [vmem:[#allocation3 + $0x100] sm:$0xff]  ;;  %743 = vmatpush.msrb.mxu0 %v726_v58 }
 0x7e4   :  { %530 = vrot.lane.b32.xlu1 %v528_v61, %s880_s1  ;;  %744 = vmatpush.msrb.mxu0 %v725_v59  ;;  %v723_v61 = vld [vmem:[#allocation3 + $0xe0] sm:$0xff] }
 0x856   :  { %v531_v63 = vpop.permute.xlu1 %530 }
 0x857   :  { %v533_v0 = vadd.f32 %v531_v63, %v527_v62  ;;  %v722_v62 = vld [vmem:[#allocation3 + $0xd0] sm:$0xff] }
 0x859   :  { %831 = vtanh.f32 %v533_v0 }
 0x85f   :  { %v832_v1 = vpop.eup %831 }
 0x860   :  { %v535_v2 = vmul.f32 %v832_v1, %v526_v60  ;;  %v724_v60 = vld [vmem:[#allocation3 + $0xf0] sm:$0xff] }
 0x861   :  { %745 = vmatpush.msrb.mxu0 %v724_v60 }
 0x862   :  { %539 = vrot.lane.b32.xlu2 %v535_v2, %s880_s1 }
 0x863   :  { %746 = vmatpush.msrb.mxu0 %v723_v61 }
 0x865   :  { %747 = vmatpush.msrb.mxu0 %v722_v62 }
 0x8bc   :  { %v540_v3 = vpop.permute.xlu2 %539 }
 0x8bd   :  { %786 = vmatmul.msk.f32.vlgmr.msra.gmra.mxu2 %vm230_vm1, %v540_v3  ;;  %787 = vmatmul.msk.f32.vlgmr.msra.gmra.mxu3 %vm230_vm1, %v540_v3  ;;  %v728_v3 = vld [vmem:[#allocation3 + $0xa4] ss:$0 sm:$0xff] }
 0x940   :  { %v560_v6 = vpop.f32.mrf.mxu2  ;;  %v580_v9 = vpop.f32.mrf.mxu3 }
 0x941   :  { %v561_v10 = vadd.f32 %v560_v6, %v137_v4  ;;  %v581_v11 = vadd.f32 %v580_v9, %v178_v5 }
 0x943   :  { %833 = vtanh.f32 %v561_v10 }
 0x944   :  { %835 = vtanh.f32 %v581_v11 }
 0x949   :  { %v834_v12 = vpop.eup %833 }
 0x94a   :  { %v836_v13 = vpop.eup %835  ;;  %v585_v14 = vmul.f32 %v834_v12, %v910_v19 }
 0x94b   :  { %v586_v30 = vmul.f32 %v836_v13, %v912_v20 }
 0x94c   :  { %v587_v31 = vadd.f32 %v585_v14, %v914_v21 }
 0x94d   :  { %v588_v32 = vadd.f32 %v586_v30, %v916_v23 }
 0x94e   :  { %v589_v34 = vmul.f32 %v587_v31, %v533_v0 }
 0x94f   :  { %v590_v33 = vmul.f32 %v588_v32, %v587_v31 }
 0x951   :  { %592 = vrot.lane.b32.xlu0 %v590_v33, %s880_s1 }
 0x9c3   :  { %v593_v35 = vpop.permute.xlu0 %592 }
 0x9c4   :  { %v595_v36 = vadd.f32 %v593_v35, %v589_v34 }
 0x9c6   :  { %837 = vtanh.f32 %v595_v36 }
 0x9cc   :  { %v838_v37 = vpop.eup %837 }
 0x9cd   :  { %v597_v38 = vmul.f32 %v838_v37, %v588_v32 }
 0x9cf   :  { %601 = vrot.lane.b32.xlu1 %v597_v38, %s880_s1 }
 0xa41   :  { %v602_v39 = vpop.permute.xlu1 %601 }
 0xa42   :  { %788 = vmatmul.msk.f32.vlgmr.msra.gmra.mxu0 %vm230_vm1, %v602_v39  ;;  %789 = vmatmul.msk.f32.vlgmr.msra.gmra.mxu1 %vm230_vm1, %v602_v39 }
 0xabf   :  { %v622_v42 = vpop.f32.mrf.mxu0  ;;  %v642_v43 = vpop.f32.mrf.mxu1 }
 0xac0   :  { %v623_v49 = vadd.f32 %v622_v42, %v140_v40  ;;  %v643_v50 = vadd.f32 %v642_v43, %v181_v41 }
 0xac2   :  { %839 = vtanh.f32 %v623_v49 }
 0xac3   :  { %841 = vtanh.f32 %v643_v50 }
 0xac8   :  { %v840_v15 = vpop.eup %839 }
 0xac9   :  { %v842_v16 = vpop.eup %841  ;;  %v647_v17 = vmul.f32 %v840_v15, %v910_v19 }
 0xaca   :  { %v648_v18 = vmul.f32 %v842_v16, %v912_v20 }
 0xacb   :  { %v649_v22 = vadd.f32 %v647_v17, %v914_v21 }
 0xacc   :  { %v650_v24 = vadd.f32 %v648_v18, %v916_v23 }
 0xacd   :  { %v651_v7 = vmul.f32 %v649_v22, %v595_v36 }
 0xace   :  { %v652_v25 = vmul.f32 %v650_v24, %v649_v22 }
 0xad0   :  { %654 = vrot.lane.b32.xlu2 %v652_v25, %s880_s1 }
 0xb2a   :  { %v655_v8 = vpop.permute.xlu2 %654 }
 0xb2b   :  { %v657_v26 = vadd.f32 %v655_v8, %v651_v7 }
 0xb2d   :  { %843 = vtanh.f32 %v657_v26 }
 0xb33   :  { %v844_v27 = vpop.eup %843 }
 0xb34   :  { %v659_v28 = vmul.f32 %v844_v27, %v650_v24 }
 0xb36   :  { %661 = vrot.lane.b32.xlu0 %v659_v28, %s880_s1 }
 0xba8   :  { %v662_v29 = vpop.permute.xlu0 %661 }
 0xba9   :  { %790 = vmatmul.msk.f32.vlgmr.msrb.gmra.mxu2 %vm230_vm1, %v662_v29  ;;  %791 = vmatmul.msk.f32.vlgmr.msrb.gmra.mxu3 %vm230_vm1, %v662_v29 }
 0xc2c   :  { %v682_v44 = vpop.f32.mrf.mxu2  ;;  %v702_v45 = vpop.f32.mrf.mxu3 }
 0xc2d   :  { %v683_v46 = vadd.f32 %v682_v44, %v140_v40  ;;  %v703_v47 = vadd.f32 %v702_v45, %v181_v41 }
 0xc2f   :  { %845 = vtanh.f32 %v683_v46 }
 0xc30   :  { %847 = vtanh.f32 %v703_v47 }
 0xc35   :  { %v846_v48 = vpop.eup %845 }
 0xc36   :  { %v848_v51 = vpop.eup %847  ;;  %v707_v52 = vmul.f32 %v846_v48, %v910_v19  ;;  %v721_v19 = vld [vmem:[#allocation3 + $0xc0] sm:$0xff] }
 0xc37   :  { %v708_v53 = vmul.f32 %v848_v51, %v912_v20  ;;  %v720_v20 = vld [vmem:[#allocation3 + $0xb0] sm:$0xff]  ;;  %748 = vmatpush.msrb.mxu0 %v721_v19 }
 0xc38   :  { %v709_v54 = vadd.f32 %v707_v52, %v914_v21 }
 0xc39   :  { %v710_v55 = vadd.f32 %v708_v53, %v916_v23  ;;  %749 = vmatpush.msrb.mxu0 %v720_v20 }
 0xc3a   :  { %v711_v21 = vmul.f32 %v709_v54, %v657_v26 }
 0xc3b   :  { %v712_v56 = vmul.f32 %v710_v55, %v709_v54 }
 0xc3d   :  { %714 = vrot.lane.b32.xlu1 %v712_v56, %s880_s1 }
 0xcaf   :  { %v715_v23 = vpop.permute.xlu1 %714 }
 0xcb0   :  { %v717_v63 = vadd.f32 %v715_v23, %v711_v21 }
 0xcb2   :  { %849 = vtanh.f32 %v717_v63 }
 0xcb8   :  { %v850_v0 = vpop.eup %849 }
 0xcb9   :  { %v719_v1 = vmul.f32 %v850_v0, %v710_v55 }
 0xcbb   :  { %730 = vrot.lane.b32.xlu2 %v719_v1, %s880_s1 }
 0xd15   :  { %v731_v2 = vpop.permute.xlu2 %730 }
 0xd16   :  { %792 = vmatmul.msk.f32.vlgmr.msrb.gmra.mxu0 %vm230_vm1, %v731_v2 }
 0xd93   :  { %v751_v4 = vpop.f32.mrf.mxu0 }
 0xd94   :  { %v752_v5 = vadd.f32 %v751_v4, %v728_v3 }
 0xd96   :  { %754 = vst.msk [vmem:[%s1208_s2] sm:$0xff] %vm76_vm0, %v752_v5 }
 0xd97   :  { %759 = vsyncpa [#allocation4], 1 }

</bundles_post_ra>
